<compile_context>
chip_gen: v7x
topology: tpu7x:2x2x1
jax: 0.10.0
libtpu: 0.0.40
codegen_flags: <defaults>
</compile_context>

<pallas_src>
import functools

import jax
import jax.numpy as jnp
from jax.experimental import pallas as pl
from jax.experimental.pallas import tpu as pltpu

HIDDEN = 256
BN_EPS = 1e-5
MIN_CONST = 0.007843138


def _round_up(x, m):
    return (x + m - 1) // m * m


def _vmem_capacity_bytes():
    """Generation-aware VMEM capacity (128 MiB v5e/v6e, 64 MiB v7x)."""
    try:
        cap = int(pltpu.get_tpu_info().vmem_capacity_bytes)
        if cap > 0:
            return cap
    except Exception:
        pass
    return 128 * 1024 * 1024


# ---------------------------------------------------------------------------
# Kernels
# ---------------------------------------------------------------------------

def _epilogue(pooled, w1_ref, b1_ref, w2_ref, b2_ref, w3_ref, b3_ref, max_ref):
    """pooled: (n_tile, C) f32  ->  max_ref block (1, n_tile, 1)."""
    n_tile = pooled.shape[0]

    # conv1 (1x1, no bias) with BN scale folded into the columns; shift as bias.
    h1 = jnp.dot(pooled.astype(jnp.bfloat16), w1_ref[...],
                 preferred_element_type=jnp.float32)
    h1 = jnp.maximum(h1 + b1_ref[...], 0.0)                     # (n_tile, 256)

    # conv2 (1x1, no bias) + folded BN + ReLU.
    h2 = jnp.dot(h1.astype(jnp.bfloat16), w2_ref[...],
                 preferred_element_type=jnp.float32)
    h2 = jnp.maximum(h2 + b2_ref[...], 0.0)                     # (n_tile, 256)

    # conv3 (1x1, with bias), max channel only (min channel is dead).
    out = jnp.dot(h2.astype(jnp.bfloat16), w3_ref[...],
                  preferred_element_type=jnp.float32)
    out = out + b3_ref[...]                                     # (n_tile, 1)
    max_ref[...] = out.reshape(1, n_tile, 1)


def absnet_single_kernel(x_ref, w1_ref, b1_ref, w2_ref, b2_ref,
                         w3_ref, b3_ref, max_ref):
    """Fast path: whole spatial extent in one block; no accumulator/pl.when."""
    pooled = jnp.max(x_ref[...], axis=-1)                       # (n_tile, C)
    _epilogue(pooled, w1_ref, b1_ref, w2_ref, b2_ref, w3_ref, b3_ref, max_ref)


def absnet_multi_kernel(x_ref, w1_ref, b1_ref, w2_ref, b2_ref,
                        w3_ref, b3_ref, max_ref, acc_ref):
    """Grid = (batch tiles [parallel], spatial tiles [arbitrary]).

    acc_ref is only (n_tile, C): each step streams its x block once and folds
    a lane-reduced partial max into the tiny accumulator (no tile-sized
    read-modify-write of scratch)."""
    k = pl.program_id(1)

    @pl.when(k == 0)
    def _init():
        acc_ref[...] = jnp.full_like(acc_ref[...], -jnp.inf)

    acc_ref[...] = jnp.maximum(acc_ref[...], jnp.max(x_ref[...], axis=-1))

    @pl.when(k == pl.num_programs(1) - 1)
    def _finalize():
        _epilogue(acc_ref[...], w1_ref, b1_ref, w2_ref, b2_ref,
                  w3_ref, b3_ref, max_ref)


# ---------------------------------------------------------------------------
# Parameters
# ---------------------------------------------------------------------------

def make_params(key, in_channels):
    k1, k2, k3 = jax.random.split(key, 3)
    # kaiming_normal_(mode='fan_out'): std = sqrt(2 / (out_ch * k*k)), k=1.
    w1 = jax.random.normal(k1, (HIDDEN, in_channels), jnp.float32) * (2.0 / HIDDEN) ** 0.5
    w2 = jax.random.normal(k2, (HIDDEN, HIDDEN), jnp.float32) * (2.0 / HIDDEN) ** 0.5
    w3 = jax.random.normal(k3, (2, HIDDEN), jnp.float32) * (2.0 / 2) ** 0.5
    b3 = jnp.zeros((2,), jnp.float32)

    # BN eval-mode fold (PyTorch default init: gamma=1, beta=0, mean=0, var=1).
    # TODO(synk): replace with trained running_mean/var + affine params.
    def bn_fold():
        gamma = jnp.ones((HIDDEN,), jnp.float32)
        beta = jnp.zeros((HIDDEN,), jnp.float32)
        mean = jnp.zeros((HIDDEN,), jnp.float32)
        var = jnp.ones((HIDDEN,), jnp.float32)
        scale = gamma / jnp.sqrt(var + BN_EPS)
        shift = beta - mean * scale
        return scale.reshape(1, HIDDEN), shift.reshape(1, HIDDEN)

    s1, sh1 = bn_fold()
    s2, sh2 = bn_fold()

    # Fold BN scale into the (pre-transposed) weight columns; keep shift as a
    # bias.  Pre-cast MXU operands to bf16 once.  Only channel 0 ("max_value")
    # of conv3 is kept -- channel 1 is dead (overwritten by a constant).
    return dict(
        w1=(w1.T * s1).astype(jnp.bfloat16),          # (C_in, 256)
        b1=sh1,                                        # (1, 256) f32
        w2=(w2.T * s2).astype(jnp.bfloat16),          # (256, 256)
        b2=sh2,                                        # (1, 256) f32
        w3_max=w3[0:1].T.astype(jnp.bfloat16),        # (256, 1)
        b3_max=b3[0].reshape(1, 1),                   # (1, 1) f32
    )


# ---------------------------------------------------------------------------
# Tiling heuristics
# ---------------------------------------------------------------------------

def _auto_hw_tile(n_tile, c_pad, hw128):
    """Largest lane-aligned spatial tile within a generation-aware budget.

    Budget ~= VMEM/5 capped at 24 MiB total for the x stream (so 3 buffers of
    up to ~8 MiB each fit on v5e/v6e; ~4 MiB each on v7x's 64 MiB VMEM)."""
    cap = _vmem_capacity_bytes()
    x_budget = min(cap // 5, 24 * 1024 * 1024)
    per_block = max(128 * 4, x_budget // 3)
    max_hw = max(128, (per_block // max(1, n_tile * c_pad * 4)) // 128 * 128)
    return int(min(hw128, max_hw))


def _x_spec(block_shape, index_map, buffer_count):
    """x-stream BlockSpec with optional >2-deep pipelining (v7x item)."""
    if buffer_count and buffer_count > 2 and hasattr(pl, "Buffered"):
        try:
            return pl.BlockSpec(block_shape, index_map,
                                pipeline_mode=pl.Buffered(buffer_count))
        except TypeError:
            pass
    return pl.BlockSpec(block_shape, index_map)


# ---------------------------------------------------------------------------
# pallas_call wrapper
# ---------------------------------------------------------------------------

@functools.partial(jax.jit, static_argnames=("n_tile", "hw_tile"))
def _absnet_pallas(x3, w1, b1, w2, b2, w3, b3, *, n_tile, hw_tile):
    n_pad, C, hw_pad = x3.shape
    hidden = w1.shape[1]
    grid_n = n_pad // n_tile
    n_k = hw_pad // hw_tile

    cap = _vmem_capacity_bytes()
    # ~96 MiB on v5e/v6e (128 MiB VMEM), ~48 MiB on v7x (64 MiB VMEM).
    vmem_limit = int(max(32 * 1024 * 1024,
                         min((cap * 3) // 4, 96 * 1024 * 1024)))

    out_shape = jax.ShapeDtypeStruct((grid_n, n_tile, 1), jnp.float32)

    matmul_flops = 2 * n_pad * (C * hidden + hidden * hidden + hidden)
    cost = pl.CostEstimate(
        flops=int(matmul_flops),
        transcendentals=0,
        bytes_accessed=int(x3.size * x3.dtype.itemsize
                           + (C + hidden + 1) * hidden * 2
                           + 2 * hidden * 4 + grid_n * n_tile * 4))

    if n_k == 1:
        # Fast path: single spatial block, no accumulator machinery.
        grid_spec = pltpu.PrefetchScalarGridSpec(
            num_scalar_prefetch=0,
            grid=(grid_n,),
            in_specs=[
                pl.BlockSpec((n_tile, C, hw_tile), lambda n: (n, 0, 0)),
                pl.BlockSpec((C, hidden), lambda n: (0, 0)),
                pl.BlockSpec((1, hidden), lambda n: (0, 0)),
                pl.BlockSpec((hidden, hidden), lambda n: (0, 0)),
                pl.BlockSpec((1, hidden), lambda n: (0, 0)),
                pl.BlockSpec((hidden, 1), lambda n: (0, 0)),
                pl.BlockSpec((1, 1), lambda n: (0, 0)),
            ],
            out_specs=pl.BlockSpec((1, n_tile, 1), lambda n: (n, 0, 0)),
            scratch_shapes=[],
        )
        kern = absnet_single_kernel
        dim_sem = ("parallel",)
    else:
        # Deeper input buffering only pays off for long spatial loops and is
        # sized so 3 buffers still fit the x-stream budget.
        buffer_count = 3 if n_k >= 8 else 2
        const_map = lambda n, k: (0, 0)
        grid_spec = pltpu.PrefetchScalarGridSpec(
            num_scalar_prefetch=0,
            grid=(grid_n, n_k),
            in_specs=[
                _x_spec((n_tile, C, hw_tile), lambda n, k: (n, 0, k),
                        buffer_count),
                # Weights / biases: constant block index -> resident in VMEM
                # across the whole spatial loop (no per-step DMA).
                pl.BlockSpec((C, hidden), const_map),
                pl.BlockSpec((1, hidden), const_map),
                pl.BlockSpec((hidden, hidden), const_map),
                pl.BlockSpec((1, hidden), const_map),
                pl.BlockSpec((hidden, 1), const_map),
                pl.BlockSpec((1, 1), const_map),
            ],
            out_specs=pl.BlockSpec((1, n_tile, 1), lambda n, k: (n, 0, 0)),
            scratch_shapes=[pltpu.VMEM((n_tile, C), jnp.float32)],
        )
        kern = absnet_multi_kernel
        dim_sem = ("parallel", "arbitrary")

    out3 = pl.pallas_call(
        kern,
        out_shape=out_shape,
        grid_spec=grid_spec,
        compiler_params=pltpu.CompilerParams(
            dimension_semantics=dim_sem,
            vmem_limit_bytes=vmem_limit),
        cost_estimate=cost,
    )(x3, w1, b1, w2, b2, w3, b3)

    return out3.reshape(grid_n * n_tile, 1)


def absnet_forward(x, params, *, n_tile=None, hw_tile=None):
    """x: (N, C, H, W) float32 (NCHW, like the PyTorch module)."""
    N, C, H, W = x.shape
    HW = H * W
    x3 = x.reshape(N, C, HW)

    if n_tile is None:
        # Guarantee >=2 batch tiles whenever N >= 2 so v7x's two TensorCores
        # both get work on the "parallel" axis (no-op for v5e/v6e).
        n_tile = max(1, min(8, N // 2)) if N >= 2 else 1
        # TODO(synk): for N == 1, split the spatial axis into 2 parallel
        # halves (one extra max in a tiny combine) so v7x's 2nd core isn't idle.
    n_tile = max(1, min(n_tile, N))
    n_pad = _round_up(N, n_tile)

    # VMEM-buffer accounting uses the sublane-padded channel count.
    # TODO(synk): for tiny C a flattened (N*C, HW) 2D streaming layout would
    # recover full vreg occupancy; not done here (regroup adds reshape risk).
    c_pad = _round_up(C, 8)
    hw128 = _round_up(HW, 128)
    if hw_tile is None:
        hw_tile = _auto_hw_tile(n_tile, c_pad, hw128)
    hw_tile = max(128, _round_up(hw_tile, 128))
    hw_tile = min(hw_tile, hw128)
    hw_pad = _round_up(HW, hw_tile)

    # Pad spatial with -inf (identity for max) and batch with zeros (sliced off).
    if hw_pad != HW:
        x3 = jnp.pad(x3, ((0, 0), (0, 0), (0, hw_pad - HW)),
                     constant_values=-jnp.inf)
    if n_pad != N:
        x3 = jnp.pad(x3, ((0, n_pad - N), (0, 0), (0, 0)))

    max_out = _absnet_pallas(
        x3,
        params["w1"], params["b1"],
        params["w2"], params["b2"],
        params["w3_max"], params["b3_max"],
        n_tile=n_tile, hw_tile=hw_tile,
    )

    max_out = max_out[:N].reshape(N, 1, 1, 1)
    # min_value = conv3_ch1 * 0 + const  -> a pure constant.  NOTE: unlike the
    # PyTorch reference this does not propagate NaN/Inf from x.
    min_out = jnp.full((N, 1, 1, 1), MIN_CONST, jnp.float32)
    return max_out, min_out


def _reference_forward(x, params):
    """Plain-JAX reference mirroring the kernel's folded-BN bf16-matmul path."""
    N, C = x.shape[0], x.shape[1]
    pooled = jnp.max(x.reshape(N, C, -1), axis=-1)
    h1 = jnp.maximum(
        jnp.dot(pooled.astype(jnp.bfloat16), params["w1"],
                preferred_element_type=jnp.float32) + params["b1"], 0.0)
    h2 = jnp.maximum(
        jnp.dot(h1.astype(jnp.bfloat16), params["w2"],
                preferred_element_type=jnp.float32) + params["b2"], 0.0)
    out = jnp.dot(h2.astype(jnp.bfloat16), params["w3_max"],
                  preferred_element_type=jnp.float32) + params["b3_max"]
    return out.reshape(N, 1, 1, 1)


if __name__ == "__main__":
    key = jax.random.PRNGKey(0)
    kp, kx = jax.random.split(key)

    N, C, H, W = 2, 4, 16, 16
    x = jax.random.normal(kx, (N, C, H, W), jnp.float32)
    params = make_params(kp, C)

    ref_max = _reference_forward(x, params)

    # 1) Default tiling: the whole 16x16 spatial extent fits one block, so the
    #    fast-path (no-accumulator) kernel is exercised, with 2 batch tiles.
    max_v, min_v = absnet_forward(x, params)
    jax.block_until_ready((max_v, min_v))
    assert max_v.shape == (N, 1, 1, 1) and min_v.shape == (N, 1, 1, 1)
    assert bool(jnp.allclose(min_v, MIN_CONST))
    assert bool(jnp.allclose(max_v, ref_max, rtol=1e-2, atol=1e-2)), (
        max_v.ravel(), ref_max.ravel())

    # 2) hw_tile=128 forces multiple spatial grid steps so the running-max
    #    accumulator / pl.when init+finalize path is exercised too.
    max_v2, _ = absnet_forward(x, params, hw_tile=128)
    jax.block_until_ready(max_v2)
    assert bool(jnp.allclose(max_v2, ref_max, rtol=1e-2, atol=1e-2)), (
        max_v2.ravel(), ref_max.ravel())

    print("KERNEL_OK")
</pallas_src>

<mosaic_0001>
module attributes {stable_mosaic.version = 11 : i64} {
  func.func @absnet_single_kernel(%arg0: i32, %arg1: memref<1x4x256xf32, #tpu.memory_space<vmem>>, %arg2: memref<4x256xbf16, #tpu.memory_space<vmem>>, %arg3: memref<1x256xf32, #tpu.memory_space<vmem>>, %arg4: memref<256x256xbf16, #tpu.memory_space<vmem>>, %arg5: memref<1x256xf32, #tpu.memory_space<vmem>>, %arg6: memref<256x1xbf16, #tpu.memory_space<vmem>>, %arg7: memref<1x1xf32, #tpu.memory_space<vmem>>, %arg8: memref<1x1x1xf32, #tpu.memory_space<vmem>>) attributes {dimension_semantics = [#tpu.dimension_semantics<parallel>], iteration_bounds = array<i64: 2>, scalar_prefetch = 0 : i64, scratch_operands = 0 : i64, tpu.core_type = #tpu.core_type<tc>, window_params = [{transform_indices = @transform_0, window_bounds = array<i64: 1, 4, 256>}, {pipeline_mode = #tpu.pipeline_mode<synchronous>, transform_indices = @transform_1, window_bounds = array<i64: 4, 256>}, {pipeline_mode = #tpu.pipeline_mode<synchronous>, transform_indices = @transform_2, window_bounds = array<i64: 1, 256>}, {pipeline_mode = #tpu.pipeline_mode<synchronous>, transform_indices = @transform_3, window_bounds = array<i64: 256, 256>}, {pipeline_mode = #tpu.pipeline_mode<synchronous>, transform_indices = @transform_4, window_bounds = array<i64: 1, 256>}, {pipeline_mode = #tpu.pipeline_mode<synchronous>, transform_indices = @transform_5, window_bounds = array<i64: 256, 1>}, {pipeline_mode = #tpu.pipeline_mode<synchronous>, transform_indices = @transform_6, window_bounds = array<i64: 1, 1>}, {transform_indices = @transform_7, window_bounds = array<i64: 1, 1, 1>}]} {
    %c0 = arith.constant 0 : index
    %c0_0 = arith.constant 0 : index
    %c0_1 = arith.constant 0 : index
    %0 = vector.load %arg1[%c0, %c0_0, %c0_1] : memref<1x4x256xf32, #tpu.memory_space<vmem>>, vector<1x4x256xf32>
    %cst = arith.constant dense<0xFF800000> : vector<1x4xf32>
    %1 = vector.multi_reduction <maximumf>, %0, %cst [2] : vector<1x4x256xf32> to vector<1x4xf32>
    %2 = arith.truncf %1 : vector<1x4xf32> to vector<1x4xbf16>
    %c0_2 = arith.constant 0 : index
    %c0_3 = arith.constant 0 : index
    %3 = vector.load %arg2[%c0_2, %c0_3] : memref<4x256xbf16, #tpu.memory_space<vmem>>, vector<4x256xbf16>
    %cst_4 = arith.constant dense<0.000000e+00> : vector<1x256xf32>
    %4 = tpu.matmul %2, %3, %cst_4 {dimension_numbers = #tpu.dot_dimension_numbers<[1], [0], [0], [1], [0, 0, 1, 1], [], []>} : vector<1x4xbf16>, vector<4x256xbf16>, vector<1x256xf32> -> vector<1x256xf32>
    %c0_5 = arith.constant 0 : index
    %c0_6 = arith.constant 0 : index
    %5 = vector.load %arg3[%c0_5, %c0_6] : memref<1x256xf32, #tpu.memory_space<vmem>>, vector<1x256xf32>
    %6 = arith.addf %4, %5 : vector<1x256xf32>
    %cst_7 = arith.constant 0.000000e+00 : f32
    %7 = vector.broadcast %cst_7 : f32 to vector<1x256xf32>
    %8 = arith.maximumf %6, %7 : vector<1x256xf32>
    %9 = arith.truncf %8 : vector<1x256xf32> to vector<1x256xbf16>
    %c0_8 = arith.constant 0 : index
    %c0_9 = arith.constant 0 : index
    %10 = vector.load %arg4[%c0_8, %c0_9] : memref<256x256xbf16, #tpu.memory_space<vmem>>, vector<256x256xbf16>
    %cst_10 = arith.constant dense<0.000000e+00> : vector<1x256xf32>
    %11 = tpu.matmul %9, %10, %cst_10 {dimension_numbers = #tpu.dot_dimension_numbers<[1], [0], [0], [1], [0, 0, 1, 1], [], []>} : vector<1x256xbf16>, vector<256x256xbf16>, vector<1x256xf32> -> vector<1x256xf32>
    %c0_11 = arith.constant 0 : index
    %c0_12 = arith.constant 0 : index
    %12 = vector.load %arg5[%c0_11, %c0_12] : memref<1x256xf32, #tpu.memory_space<vmem>>, vector<1x256xf32>
    %13 = arith.addf %11, %12 : vector<1x256xf32>
    %cst_13 = arith.constant 0.000000e+00 : f32
    %14 = vector.broadcast %cst_13 : f32 to vector<1x256xf32>
    %15 = arith.maximumf %13, %14 : vector<1x256xf32>
    %16 = arith.truncf %15 : vector<1x256xf32> to vector<1x256xbf16>
    %c0_14 = arith.constant 0 : index
    %c0_15 = arith.constant 0 : index
    %17 = vector.load %arg6[%c0_14, %c0_15] : memref<256x1xbf16, #tpu.memory_space<vmem>>, vector<256x1xbf16>
    %cst_16 = arith.constant dense<0.000000e+00> : vector<1x1xf32>
    %18 = tpu.matmul %16, %17, %cst_16 {dimension_numbers = #tpu.dot_dimension_numbers<[1], [0], [0], [1], [0, 0, 1, 1], [], []>} : vector<1x256xbf16>, vector<256x1xbf16>, vector<1x1xf32> -> vector<1x1xf32>
    %c0_17 = arith.constant 0 : index
    %c0_18 = arith.constant 0 : index
    %19 = vector.load %arg7[%c0_17, %c0_18] : memref<1x1xf32, #tpu.memory_space<vmem>>, vector<1x1xf32>
    %20 = arith.addf %18, %19 : vector<1x1xf32>
    %21 = vector.shape_cast %20 : vector<1x1xf32> to vector<1x1x1xf32>
    %c0_19 = arith.constant 0 : index
    %c0_20 = arith.constant 0 : index
    %c0_21 = arith.constant 0 : index
    %22 = vector.load %arg8[%c0_19, %c0_20, %c0_21] : memref<1x1x1xf32, #tpu.memory_space<vmem>>, vector<1x1x1xf32>
    tpu.vector_store %arg8[%c0_19, %c0_20, %c0_21], %21 {strides = array<i32>} : memref<1x1x1xf32, #tpu.memory_space<vmem>>, vector<1x1x1xf32>,
    return
  }
  func.func @transform_0(%arg0: i32) -> (i32, i32, i32) {
    %c0_i32 = arith.constant 0 : i32
    %c0_i32_0 = arith.constant 0 : i32
    %c0_i32_1 = arith.constant 0 : i32
    return %arg0, %c0_i32, %c0_i32_0 : i32, i32, i32
  }
  func.func @transform_1(%arg0: i32) -> (i32, i32) {
    %c0_i32 = arith.constant 0 : i32
    %c0_i32_0 = arith.constant 0 : i32
    %c0_i32_1 = arith.constant 0 : i32
    return %c0_i32, %c0_i32_0 : i32, i32
  }
  func.func @transform_2(%arg0: i32) -> (i32, i32) {
    %c0_i32 = arith.constant 0 : i32
    %c0_i32_0 = arith.constant 0 : i32
    %c0_i32_1 = arith.constant 0 : i32
    return %c0_i32, %c0_i32_0 : i32, i32
  }
  func.func @transform_3(%arg0: i32) -> (i32, i32) {
    %c0_i32 = arith.constant 0 : i32
    %c0_i32_0 = arith.constant 0 : i32
    %c0_i32_1 = arith.constant 0 : i32
    return %c0_i32, %c0_i32_0 : i32, i32
  }
  func.func @transform_4(%arg0: i32) -> (i32, i32) {
    %c0_i32 = arith.constant 0 : i32
    %c0_i32_0 = arith.constant 0 : i32
    %c0_i32_1 = arith.constant 0 : i32
    return %c0_i32, %c0_i32_0 : i32, i32
  }
  func.func @transform_5(%arg0: i32) -> (i32, i32) {
    %c0_i32 = arith.constant 0 : i32
    %c0_i32_0 = arith.constant 0 : i32
    %c0_i32_1 = arith.constant 0 : i32
    return %c0_i32, %c0_i32_0 : i32, i32
  }
  func.func @transform_6(%arg0: i32) -> (i32, i32) {
    %c0_i32 = arith.constant 0 : i32
    %c0_i32_0 = arith.constant 0 : i32
    %c0_i32_1 = arith.constant 0 : i32
    return %c0_i32, %c0_i32_0 : i32, i32
  }
  func.func @transform_7(%arg0: i32) -> (i32, i32, i32) {
    %c0_i32 = arith.constant 0 : i32
    %c0_i32_0 = arith.constant 0 : i32
    %c0_i32_1 = arith.constant 0 : i32
    return %arg0, %c0_i32, %c0_i32_0 : i32, i32, i32
  }
}

</mosaic_0001>

<bundles_post_ra>
// kernel: _absnet_pallas.1
= control target key start
LH: loop header
LB: loop body
LE: loop exit
PB: predicated region body
PF: predicated region fallthrough
CT: control target
= control target key end

     0   :  { %s1871_s0 = inlined_call_operand.hbm [shape: f32[2,4,256], index: 0, kind: input, shape index: {}]   ;;  %s1872_s1 = inlined_call_operand.hbm [shape: bf16[4,256], index: 1, kind: input, shape index: {}]   ;;  %s1873_s2 = inlined_call_operand.hbm [shape: f32[1,256], index: 2, kind: input, shape index: {}]   ;;  %s1874_s3 = inlined_call_operand.hbm [shape: bf16[256,256], index: 3, kind: input, shape index: {}]   ;;  %s1875_s4 = inlined_call_operand.hbm [shape: f32[1,256], index: 4, kind: input, shape index: {}]   ;;  %s1876_s5 = inlined_call_operand.hbm [shape: bf16[256,1], index: 5, kind: input, shape index: {}]   ;;  %s1877_s6 = inlined_call_operand.<no memory space> [shape: f32[1,1], index: 6, kind: input, shape index: {}]   ;;  %s1878_s7 = inlined_call_operand.hbm [shape: f32[2,1,1], index: 7, kind: output, shape index: {}]  }
   0x1   :  { %v12_v0 = vstv %s1877_s6 }
   0x2   :  { %13 = vst [vmem:[#allocation2] sm:$0x1] %v12_v0 }
   0x3   :  { %14 = vsyncpa [#allocation4], 0 }
   0x4   :  { %16 = vsyncpa [#allocation4 + $0x1], 0 }
   0x5   :  { %17 = vsyncpa [#allocation7], 0 }
   0x6   :  { %18 = vsyncpa [#allocation10], 0 }
   0x7   :  { %19 = vsyncpa [#allocation13], 0 }
   0x8   :  { %20 = vsyncpa [#allocation5], 0 }
   0x9   :  { %22 = vsyncpa [#allocation5 + $0x1], 0  ;;  %s1576_s26 = smov 0   ;;  %s1578_s27 = smov 0  }
   0xa   :  { %s1580_s28 = smov 0   ;;  %s1582_s29 = smov 0  }
   0xb LB: > { %s1521_s6 = smov [#allocation6]   ;;  %s1597_s8 = sadd.s32 4294967295, %s1519_s29   ;;  %s1519_s29 = sphi %s1582_s29, %s1903_s29   ;;  %s1515_s28 = sphi %s1580_s28, %s1902_s28   ;;  %s1511_s27 = sphi %s1578_s27, %s1901_s27   ;;  %s1507_s26 = sphi %s1576_s26, %s1900_s26  }
   0xc   : > { %s224_s30 = sshll.u32 %s1521_s6, 4  ;;  %p1010_p0 = scmp.ge.s32.totalorder %s1519_s29, 1  ;;  %s225_s30 = int_to_ptr.vmem [resolvable:$true] %s224_s30 }
   0xd   : > { %p1879_p1 = scmp.eq.s32.totalorder %s1597_s8, 0  ;;  %p211_p2 = scmp.lt.s32.totalorder %s1519_s29, 3 }
   0xe   : > { %s1522_s10 = smov [#allocation9]   ;;  %s1523_s13 = smov [#allocation8]  }
   0xf   : > { %p1602_p3 = pnand %p1010_p0, %p211_p2  ;;  %s245_s11 = sshll.u32 %s1522_s10, 4  ;;  %s1609_s11 = int_to_ptr.vmem [resolvable:$true] %s245_s11 }
  0x10   : > { %s235_s14 = sshll.u32 %s1523_s13, 4  ;;  %s1271_s17 = scalar_lea.hbm %s1872_s1, 64  ;;  %s1617_s14 = int_to_ptr.vmem [resolvable:$true] %s235_s14 }
  0x11   : > { %s1882_s9 = scalar_select %p1602_p3, 1, 0 }
  0x12   : > { %p1128_p5 = pneg %p1602_p3  ;;  %p1272_p7 = scmp.ne.s32.totalorder %s1872_s1, %s1271_s17 }
  0x13   : > { %p1278_p11 = scmp.lt.u32.totalorder %s1271_s17, %s1872_s1 }
  0x14   : > { %p1613_p6 = pnand %p1128_p5, %p1879_p1 }
  0x16   : > { %p1627_p8 = pneg %p1613_p6 }
  0x18   : > { %p1274_p9 = pnand %p1627_p8, %p1272_p7 }
  0x1a   : > { %p1275_p10 = pneg %p1274_p9 }
  0x1c   : > { %p1280_p12 = pnand %p1278_p11, %p1275_p10 }
  0x1e   : > { %1283 = shalt.err (!%p1280_p12)
}
  0x1f   : > { %s1284_s23 = scalar_lea.vmem %s225_s30, 64  ;;  %p1292_p5 = scmp.lt.s32.totalorder %s225_s30, %s225_s30 }
  0x20   : > { %p1285_p13 = scmp.ne.s32.totalorder %s225_s30, %s1284_s23  ;;  %p1293_p4 = scmp.lt.s32.totalorder %s1284_s23, %s1284_s23 }
  0x22   : > { %p1287_p0 = pnand %p1285_p13, %p1627_p8  ;;  %p1294_p1 = por %p1293_p4, %p1292_p5 }
  0x24   : > { %p1288_p2 = pneg %p1287_p0 }
  0x26   : > { %p1295_p3 = pnand %p1294_p1, %p1288_p2 }
  0x28   : > { %1298 = shalt.err (!%p1295_p3)
}
  0x29   : > { %1131 = dma.hbm_to_vmem [thread:$0]  (!%p1613_p6), %s1872_s1, 64, %s225_s30, [#allocation7]  }
  0x2a   : > { %s1299_s13 = scalar_lea.hbm %s1874_s3, 4096 }
  0x2b   : > { %p1300_p7 = scmp.ne.s32.totalorder %s1874_s3, %s1299_s13  ;;  %p1306_p1 = scmp.lt.u32.totalorder %s1299_s13, %s1874_s3 }
  0x2d   : > { %p1302_p9 = pnand %p1300_p7, %p1627_p8 }
  0x2f   : > { %p1303_p4 = pneg %p1302_p9 }
  0x31   : > { %p1308_p3 = pnand %p1306_p1, %p1303_p4 }
  0x33   : > { %1311 = shalt.err (!%p1308_p3)
}
  0x34   : > { %s1312_s30 = scalar_lea.vmem %s1609_s11, 4096  ;;  %p1320_p13 = scmp.lt.s32.totalorder %s1609_s11, %s1609_s11 }
  0x35   : > { %p1313_p10 = scmp.ne.s32.totalorder %s1609_s11, %s1312_s30  ;;  %p1321_p0 = scmp.lt.s32.totalorder %s1312_s30, %s1312_s30 }
  0x37   : > { %p1315_p11 = pnand %p1313_p10, %p1627_p8  ;;  %p1322_p2 = por %p1321_p0, %p1320_p13 }
  0x39   : > { %p1316_p12 = pneg %p1315_p11 }
  0x3b   : > { %p1323_p5 = pnand %p1322_p2, %p1316_p12 }
  0x3d   : > { %1326 = shalt.err (!%p1323_p5)
}
  0x3e   : > { %s1524_s19 = smov 128   ;;  %s1525_s21 = smov 8  }
  0x3f   : > { %1137 = dma.hbm_to_vmem [thread:$0]  (!%p1613_p6), %s1874_s3, 4096, %s1609_s11, [#allocation10], %s1524_s19, %s1524_s19, %s1525_s21  }
  0x40   : > { %s1327_s6 = scalar_lea.hbm %s1873_s2, 32 }
  0x41   : > { %p1328_p7 = scmp.ne.s32.totalorder %s1873_s2, %s1327_s6  ;;  %p1334_p1 = scmp.lt.u32.totalorder %s1327_s6, %s1873_s2 }
  0x43   : > { %p1330_p9 = pnand %p1328_p7, %p1627_p8 }
  0x45   : > { %p1331_p4 = pneg %p1330_p9 }
  0x47   : > { %p1336_p3 = pnand %p1334_p1, %p1331_p4 }
  0x49   : > { %1339 = shalt.err (!%p1336_p3)
}
  0x4a   : > { %s1340_s11 = scalar_lea.vmem %s1617_s14, 32  ;;  %p1348_p13 = scmp.lt.s32.totalorder %s1617_s14, %s1617_s14 }
  0x4b   : > { %p1341_p10 = scmp.ne.s32.totalorder %s1617_s14, %s1340_s11  ;;  %p1349_p0 = scmp.lt.s32.totalorder %s1340_s11, %s1340_s11 }
  0x4d   : > { %p1343_p11 = pnand %p1341_p10, %p1627_p8  ;;  %p1350_p2 = por %p1349_p0, %p1348_p13 }
  0x4f   : > { %p1344_p12 = pneg %p1343_p11 }
  0x51   : > { %p1351_p5 = pnand %p1350_p2, %p1344_p12 }
  0x53   : > { %1354 = shalt.err (!%p1351_p5)
}
  0x54   : > { %1134 = dma.hbm_to_vmem [thread:$0]  (!%p1613_p6), %s1873_s2, 32, %s1617_s14, [#allocation7]  }
  0x55   : > { %s1526_s30 = smov [#allocation11]   ;;  %s1527_s21 = smov [#allocation12]  }
  0x56   : > { %s259_s19 = sshll.u32 %s1526_s30, 4  ;;  %s269_s22 = sshll.u32 %s1527_s21, 4  ;;  %s260_s19 = int_to_ptr.vmem [resolvable:$true] %s259_s19  ;;  %s270_s22 = int_to_ptr.vmem [resolvable:$true] %s269_s22 }
  0x57   : > { %s1355_s25 = scalar_lea.hbm %s1875_s4, 32 }
  0x58   : > { %p1356_p7 = scmp.ne.s32.totalorder %s1875_s4, %s1355_s25  ;;  %p1362_p1 = scmp.lt.u32.totalorder %s1355_s25, %s1875_s4 }
  0x5a   : > { %p1358_p9 = pnand %p1356_p7, %p1627_p8 }
  0x5c   : > { %p1359_p4 = pneg %p1358_p9 }
  0x5e   : > { %p1364_p3 = pnand %p1362_p1, %p1359_p4 }
  0x60   : > { %1367 = shalt.err (!%p1364_p3)
}
  0x61   : > { %s1368_s14 = scalar_lea.vmem %s260_s19, 32  ;;  %p1376_p13 = scmp.lt.s32.totalorder %s260_s19, %s260_s19 }
  0x62   : > { %p1369_p10 = scmp.ne.s32.totalorder %s260_s19, %s1368_s14  ;;  %p1377_p0 = scmp.lt.s32.totalorder %s1368_s14, %s1368_s14 }
  0x64   : > { %p1371_p11 = pnand %p1369_p10, %p1627_p8  ;;  %p1378_p2 = por %p1377_p0, %p1376_p13 }
  0x66   : > { %p1372_p12 = pneg %p1371_p11 }
  0x68   : > { %p1379_p5 = pnand %p1378_p2, %p1372_p12 }
  0x6a   : > { %1382 = shalt.err (!%p1379_p5)
}
  0x6b   : > { %1140 = dma.hbm_to_vmem [thread:$0]  (!%p1613_p6), %s1875_s4, 32, %s260_s19, [#allocation10]  }
  0x6c   : > { %s1383_s30 = scalar_lea.hbm %s1876_s5, 2048 }
  0x6d   : > { %p1384_p7 = scmp.ne.s32.totalorder %s1876_s5, %s1383_s30  ;;  %p1390_p1 = scmp.lt.u32.totalorder %s1383_s30, %s1876_s5 }
  0x6f   : > { %p1386_p9 = pnand %p1384_p7, %p1627_p8 }
  0x71   : > { %p1387_p4 = pneg %p1386_p9 }
  0x73   : > { %p1392_p3 = pnand %p1390_p1, %p1387_p4 }
  0x75   : > { %1395 = shalt.err (!%p1392_p3)
}
  0x76   : > { %s1396_s6 = scalar_lea.vmem %s270_s22, 2048  ;;  %p1404_p13 = scmp.lt.s32.totalorder %s270_s22, %s270_s22 }
  0x77   : > { %p1397_p10 = scmp.ne.s32.totalorder %s270_s22, %s1396_s6  ;;  %p1405_p0 = scmp.lt.s32.totalorder %s1396_s6, %s1396_s6 }
  0x79   : > { %p1399_p11 = pnand %p1397_p10, %p1627_p8  ;;  %p1406_p2 = por %p1405_p0, %p1404_p13 }
  0x7b   : > { %p1400_p12 = pneg %p1399_p11 }
  0x7d   : > { %p1407_p5 = pnand %p1406_p2, %p1400_p12 }
  0x7f   : > { %1410 = shalt.err (!%p1407_p5)
}
  0x80   : > { %s1528_s19 = smov 64   ;;  %s1529_s20 = smov 4  }
  0x81   : > { %1143 = dma.hbm_to_vmem [thread:$0]  (!%p1613_p6), %s1876_s5, 2048, %s270_s22, [#allocation13], %s1528_s19, %s1528_s19, %s1529_s20  }
  0x82   : > { %s1009_s15 = sadd.s32 4294967294, %s1519_s29   ;;  %s1727_s14 = sadd.s32 1, %s1519_s29  }
  0x83   : > { %s35_s16 = sadd.s32 1, %s1515_s28  ;;  %s32_s11 = ssub.s32 %s1519_s29, %s1727_s14 }
  0x84   : > { %p42_p8 = scmp.ne.s32.totalorder %s1515_s28, %s1511_s27  ;;  %p33_p7 = scmp.eq.s32.totalorder %s32_s11, 0 }
  0x85   : > { %p43_p9 = scmp.eq.s32.totalorder %s1519_s29, 0  ;;  %p48_p4 = scmp.ne.s32.totalorder %s1511_s27, %s1507_s26 }
  0x86   : > { %p198_p1 = scmp.eq.s32.totalorder %s1597_s8, 1  ;;  %p1885_p10 = scmp.eq.s32.totalorder %s1597_s8, 0 }
  0x87   : > { %s1739_s17 = scalar_select %p33_p7, %s1515_s28, %s35_s16  }
  0x88   : > { %p44_p3 = por %p43_p9, %p42_p8  ;;  %p1743_p11 = por %p1885_p10, %p48_p4 }
  0x89   : > { %p1747_p6 = por %p198_p1, %p42_p8  ;;  %p204_p12 = scmp.eq.s32.totalorder %s1009_s15, 1 }
  0x8a   : > { %p1157_p13 = scmp.lt.s32.totalorder %s1519_s29, 2  ;;  %s286_s18 = sand.u32 1, %s1515_s28  }
  0x8b   : > { %s1887_s22 = scalar_select %p1747_p6, 1, 0 }
  0x8c   : > { %p1753_p0 = por %p204_p12, %p48_p4  ;;  %s1017_s21 = sshll.u32 %s286_s18, 3 }
  0x8d   : > { %s1081_s23 = sshll.u32 %s1519_s29, 7  ;;  %s290_s19 = scalar_lea.vmem [#allocation3], %s1017_s21 }
  0x8e   : > { %s1888_s30 = scalar_select %p1753_p0, 1, 0 }
  0x8f   : > { %s1761_s6 = scalar_lea.hbm %s1871_s0, %s1081_s23  ;;  %s298_s20 = sshll.u32 %s290_s19, 4  ;;  %s1767_s20 = int_to_ptr.vmem [resolvable:$true] %s298_s20 }
  0x90   : > { %p1763_p2 = pnand %p1157_p13, %p44_p3  ;;  %s287_s13 = scalar_lea.sflag [#allocation4], %s286_s18 }
  0x91   : > { %s1411_s15 = scalar_lea.hbm %s1761_s6, 128  ;;  %s1416_s21 = scalar_lea.hbm %s1871_s0, 256 }
  0x92   : > { %p1412_p5 = scmp.ne.s32.totalorder %s1761_s6, %s1411_s15  ;;  %p1413_p8 = pneg %p1763_p2 }
  0x93   : > { %p1417_p4 = scmp.lt.u32.totalorder %s1761_s6, %s1871_s0  ;;  %p1418_p1 = scmp.lt.u32.totalorder %s1416_s21, %s1411_s15 }
  0x94   : > { %p1414_p7 = pnand %p1413_p8, %p1412_p5  ;;  %p1420_p10 = scmp.lt.u32.totalorder %s1411_s15, %s1761_s6 }
  0x95   : > { %p1419_p3 = por %p1418_p1, %p1417_p4 }
  0x96   : > { %p1415_p9 = pneg %p1414_p7 }
  0x97   : > { %p1421_p12 = por %p1420_p10, %p1419_p3 }
  0x99   : > { %p1422_p13 = pnand %p1421_p12, %p1415_p9 }
  0x9b   : > { %1425 = shalt.err (!%p1422_p13)
}
  0x9c   : > { %s1426_s18 = scalar_lea.vmem %s1767_s20, 128  ;;  %s1530_s25 = smov [#allocation3]  }
  0x9d   : > { %p1427_p5 = scmp.ne.s32.totalorder %s1767_s20, %s1426_s18  ;;  %s1431_s19 = sshll.u32 %s1530_s25, 4  ;;  %s1432_s19 = int_to_ptr.vmem [resolvable:$false] %s1431_s19 }
  0x9e   : > { %s1433_s16 = scalar_lea.vmem %s1432_s19, 256  ;;  %p1434_p6 = scmp.lt.s32.totalorder %s1767_s20, %s1432_s19 }
  0x9f   : > { %p1429_p7 = pnand %p1427_p5, %p1413_p8  ;;  %p1435_p4 = scmp.lt.s32.totalorder %s1433_s16, %s1426_s18 }
  0xa1   : > { %p1430_p0 = pneg %p1429_p7  ;;  %p1436_p1 = por %p1435_p4, %p1434_p6 }
  0xa3   : > { %p1437_p3 = pnand %p1436_p1, %p1430_p0 }
  0xa5   : > { %1440 = shalt.err (!%p1437_p3)
}
  0xa6   : > { %1147 = dma.hbm_to_vmem [thread:$0]  (!%p1763_p2), %s1761_s6, 128, %s1767_s20, %s287_s13  }
  0xa7   : > { %p1890_p9 = scmp.ne.s32.totalorder %s1882_s9, 0 }
  0xa8   : > { %s1797_s15 = sand.u32 (!%p1890_p9), 1, %s1511_s27  }
  0xa9   : > { %307 = sbr.rel (%p1890_p9) target bundleno = 1014 (0x3f6), region = 48  ;;  %s1021_s11 = sshll.u32 (!%p1890_p9), %s1797_s15, 3 }
  0xaa   : > { %s310_s21 = scalar_lea.sflag (!%p1890_p9), [#allocation4], %s1797_s15  ;;  %s313_s23 = scalar_lea.vmem (!%p1890_p9), [#allocation3], %s1021_s11 }
  0xb0   : > { %1486 = dma.done.wait (%p1743_p11), %s310_s21, 128  }
  0xb1   : > { %1488 = vsyncadd (%p1743_p11), %s310_s21, 4294967168  ;;  %p1891_p6 = scmp.eq.s32.totalorder %s1597_s8, 0 }
  0xb3   : > { %1490 = dma.done.wait (%p1891_p6), [#allocation7], 96   ;;  %p1892_p0 = pmov %p1891_p6 }
  0xb5   : > { %1492 = vsyncadd (%p1892_p0), [#allocation7], 4294967200  ;;  %p1893_p2 = pmov %p1892_p0 }
  0xb6   : > { %p1894_p8 = pmov %p1892_p0 }
  0xb7   : > { %1494 = dma.done.wait (%p1893_p2), [#allocation10], 4128  }
  0xb8   : > { %1496 = vsyncadd (%p1894_p8), [#allocation10], 4294963168  ;;  %p1895_p10 = pmov %p1892_p0 }
  0xb9   : > { %p1896_p12 = pmov %p1892_p0 }
  0xba   : > { %1498 = dma.done.wait (%p1895_p10), [#allocation13], 2048  }
  0xbb   : > { %1500 = vsyncadd (%p1896_p12), [#allocation13], 4294965248  ;;  %vm368_vm0 = vcmask 1043456   ;;  %v364_v1 = vld [vmem:[%s313_s23] sm:$0xff]  ;;  %vm410_vm1 = vcmask 1041408   ;;  %v1531_v9 = vmov 0   ;;  %v379_v38 = vlaneseq }
  0xbc   : > { %v366_v2 = vcombine.high %v364_v1, %v364_v1  ;;  %v369_v3 = vsel %vm368_vm0, %v364_v1, -inf  ;;  %v1027_v6 = vld.sshfl [vmem:[#allocation6] sm:$0x33 pattern:$0x76325410]  ;;  %449 = vmatprep.mubr.bf16.mxu0 %v1531_v9  ;;  %vm406_vm2 = vcmask 31744  }
  0xbd   : > { %v394_v7 = vcombine.high %v1027_v6, %v1027_v6  ;;  %v412_v8 = vsel %vm410_vm1, %v1027_v6, 0  ;;  %v1207_v10 = vld [vmem:[#allocation9 + $0x4] ss:$8 sps:$4 sm:$0xff]   ;;  %v1209_v11 = vld [vmem:[#allocation9] ss:$8 sps:$4 sm:$0xff]   ;;  %v380_v39 = vand.u32 127, %v379_v38 }
  0xbe   : > { %v370_v4 = vsel %vm368_vm0, %v366_v2, -inf  ;;  %v1210_v12 = vld [vmem:[#allocation9 + $0x14] ss:$8 sps:$4 sm:$0xff]   ;;  %666 = vmatprep.subr.bf16.mxu1 %v1207_v10  ;;  %v1212_v13 = vld [vmem:[#allocation9 + $0x10] ss:$8 sps:$4 sm:$0xff]   ;;  %v1817_v40 = vshrl.u32 %v379_v38, 7 }
  0xbf   : > { %v371_v5 = vmax.f32 %v369_v3, %v370_v4  ;;  %1028 = vmatprep.subr.msk.bf16.mxu0 %vm410_vm1, %v394_v7  ;;  %667 = vmatpush1.bf16.msra.mxu1 %v1209_v11  ;;  %v1213_v14 = vld [vmem:[#allocation9 + $0x24] ss:$8 sps:$4 sm:$0xff]   ;;  %v1215_v15 = vld [vmem:[#allocation9 + $0x20] ss:$8 sps:$4 sm:$0xff]   ;;  %v1216_v16 = vld [vmem:[#allocation9 + $0x34] ss:$8 sps:$4 sm:$0xff]  }
  0xc0   : > { %418 = vmatpush1.bf16.msra.mxu0 %v412_v8  ;;  %668 = vmatprep.subr.bf16.mxu1 %v1210_v12  ;;  %v1218_v17 = vld [vmem:[#allocation9 + $0x30] ss:$8 sps:$4 sm:$0xff]   ;;  %v1219_v18 = vld [vmem:[#allocation9 + $0x44] ss:$8 sps:$4 sm:$0xff]   ;;  %v1221_v19 = vld [vmem:[#allocation9 + $0x40] ss:$8 sps:$4 sm:$0xff]   ;;  %v383_v43 = vsub.s32 %v380_v39, %v1817_v40 }
  0xc1   : > { %372 = vmax.xlane.f32.xlu0 %v371_v5  ;;  %v1222_v20 = vld [vmem:[#allocation9 + $0x54] ss:$8 sps:$4 sm:$0xff]   ;;  %v1224_v21 = vld [vmem:[#allocation9 + $0x50] ss:$8 sps:$4 sm:$0xff]   ;;  %v1225_v22 = vld [vmem:[#allocation9 + $0x64] ss:$8 sps:$4 sm:$0xff]  }
  0xc2   : > { %v1227_v23 = vld [vmem:[#allocation9 + $0x60] ss:$8 sps:$4 sm:$0xff]   ;;  %v1228_v24 = vld [vmem:[#allocation9 + $0x74] ss:$8 sps:$4 sm:$0xff]   ;;  %v1230_v25 = vld [vmem:[#allocation9 + $0x70] ss:$8 sps:$4 sm:$0xff]  }
  0xc3   : > { %669 = vmatpush1.bf16.msra.mxu1 %v1212_v13  ;;  %v1231_v26 = vld [vmem:[#allocation9 + $0x84] ss:$8 sps:$4 sm:$0xff]   ;;  %v1233_v27 = vld [vmem:[#allocation9 + $0x80] ss:$8 sps:$4 sm:$0xff]   ;;  %v1234_v28 = vld [vmem:[#allocation9 + $0x94] ss:$8 sps:$4 sm:$0xff]  }
  0xc4   : > { %670 = vmatprep.subr.bf16.mxu1 %v1213_v14  ;;  %v1236_v29 = vld [vmem:[#allocation9 + $0x90] ss:$8 sps:$4 sm:$0xff]   ;;  %v1237_v30 = vld [vmem:[#allocation9 + $0xa4] ss:$8 sps:$4 sm:$0xff]   ;;  %v1239_v31 = vld [vmem:[#allocation9 + $0xa0] ss:$8 sps:$4 sm:$0xff]  }
  0xc5   : > { %v1240_v32 = vld [vmem:[#allocation9 + $0xb4] ss:$8 sps:$4 sm:$0xff]   ;;  %v1242_v33 = vld [vmem:[#allocation9 + $0xb0] ss:$8 sps:$4 sm:$0xff]   ;;  %v1243_v34 = vld [vmem:[#allocation9 + $0xc4] ss:$8 sps:$4 sm:$0xff]  }
  0xc6   : > { %v1245_v35 = vld [vmem:[#allocation9 + $0xc0] ss:$8 sps:$4 sm:$0xff]   ;;  %v1246_v36 = vld [vmem:[#allocation9 + $0xd4] ss:$8 sps:$4 sm:$0xff]   ;;  %v1248_v37 = vld [vmem:[#allocation9 + $0xd0] ss:$8 sps:$4 sm:$0xff]  }
  0xc7   : > { %671 = vmatpush1.bf16.msra.mxu1 %v1215_v15  ;;  %v1249_v47 = vld [vmem:[#allocation9 + $0xe4] ss:$8 sps:$4 sm:$0xff]   ;;  %v1251_v48 = vld [vmem:[#allocation9 + $0xe0] ss:$8 sps:$4 sm:$0xff]   ;;  %v1252_v49 = vld [vmem:[#allocation9 + $0xf4] ss:$8 sps:$4 sm:$0xff]  }
  0xc8   : > { %672 = vmatprep.subr.bf16.mxu1 %v1216_v16  ;;  %v1254_v50 = vld [vmem:[#allocation9 + $0xf0] ss:$8 sps:$4 sm:$0xff]   ;;  %v1255_v51 = vld [vmem:[#allocation12 + $0x40] sm:$0xff]   ;;  %v398_v63 = vsub.s32 0, %v1817_v40  ;;  %v376_v0 = vld [vmem:[#allocation8] sm:$0x3] }
  0xc9   : > { %v1256_v52 = vld [vmem:[#allocation12] sm:$0xff]   ;;  %v1257_v53 = vld [vmem:[#allocation12 + $0x48] sm:$0xff]   ;;  %1082 = vmatprep.subr.bf16.mxu0 %v1255_v51  ;;  %v1259_v55 = vld [vmem:[#allocation12 + $0x50] sm:$0xff]   ;;  %v402_v1 = vsub.s32 1, %v1817_v40  ;;  %s1078_s9 = sshll.u32 %s1597_s8, 4  ;;  %s362_s12 = scalar_lea.vmem [#allocation14], %s1797_s15 }
  0xca   : > { %v1258_v54 = vld [vmem:[#allocation12 + $0x8] sm:$0xff]   ;;  %v1260_v56 = vld [vmem:[#allocation12 + $0x10] sm:$0xff]   ;;  %v1261_v57 = vld [vmem:[#allocation12 + $0x58] sm:$0xff]   ;;  %v399_v2 = vrot.slane %v376_v0, %v398_v63  ;;  %s895_s6 = sshll.u32 %s362_s12, 4  ;;  %vm880_vm3 = vcmask 0   ;;  %s1827_s13 = scalar_lea.hbm %s1878_s7, %s1078_s9  ;;  %s1829_s6 = int_to_ptr.vmem [resolvable:$true] %s895_s6 }
  0xcb   : > { %673 = vmatpush1.bf16.msra.mxu1 %v1218_v17  ;;  %v1262_v58 = vld [vmem:[#allocation12 + $0x18] sm:$0xff]   ;;  %v1263_v59 = vld [vmem:[#allocation12 + $0x60] sm:$0xff]   ;;  %v1265_v61 = vld [vmem:[#allocation12 + $0x68] sm:$0xff]   ;;  %v403_v3 = vrot.slane %v376_v0, %v402_v1  ;;  %s883_s24 = scalar_lea.sflag [#allocation5], %s1797_s15  ;;  %s1441_s8 = scalar_lea.vmem %s1829_s6, 16 }
  0xcc   : > { %674 = vmatprep.subr.bf16.mxu1 %v1219_v18  ;;  %v1264_v60 = vld [vmem:[#allocation12 + $0x20] sm:$0xff]   ;;  %v1266_v62 = vld [vmem:[#allocation12 + $0x28] sm:$0xff]   ;;  %v1267_v14 = vld [vmem:[#allocation12 + $0x70] sm:$0xff]   ;;  %p1442_p11 = scmp.ne.s32.totalorder %s1829_s6, %s1441_s8  ;;  %p1897_p13 = scmp.ne.s32.totalorder %s1887_s22, 0 }
  0xcd   : > { %v1268_v15 = vld [vmem:[#allocation12 + $0x30] sm:$0xff]   ;;  %v1269_v16 = vld [vmem:[#allocation12 + $0x78] sm:$0xff]   ;;  %s1532_s18 = smov [#allocation14]  }
  0xce   : > { %v1270_v17 = vld [vmem:[#allocation12 + $0x38] sm:$0xff]   ;;  %p1443_p5 = pnand %p1442_p11, %p1897_p13  ;;  %s1445_s25 = sshll.u32 %s1532_s18, 4  ;;  %s1446_s25 = int_to_ptr.vmem [resolvable:$false] %s1445_s25 }
  0xcf   : > { %675 = vmatpush1.bf16.msra.mxu1 %v1221_v19  ;;  %v494_v18 = vld [vmem:[#allocation11] sm:$0x3]  ;;  %s1447_s19 = scalar_lea.vmem %s1446_s25, 32  ;;  %p1448_p4 = scmp.lt.s32.totalorder %s1829_s6, %s1446_s25 }
  0xd0   : > { %676 = vmatprep.subr.bf16.mxu1 %v1222_v20  ;;  %v659_v19 = vrot.slane %v494_v18, %v398_v63  ;;  %v663_v20 = vrot.slane %v494_v18, %v402_v1  ;;  %p1444_p7 = pneg %p1443_p5  ;;  %p1449_p1 = scmp.lt.s32.totalorder %s1447_s19, %s1441_s8 }
  0xd2   : > { %p1450_p3 = por %p1449_p1, %p1448_p4 }
  0xd3   : > { %677 = vmatpush1.bf16.msra.mxu1 %v1224_v21 }
  0xd4   : > { %678 = vmatprep.subr.bf16.mxu1 %v1225_v22  ;;  %p1451_p9 = pnand %p1450_p3, %p1444_p7 }
  0xd7   : > { %679 = vmatpush1.bf16.msra.mxu1 %v1227_v23 }
  0xd8   : > { %680 = vmatprep.subr.bf16.mxu1 %v1228_v24 }
  0xdb   : > { %681 = vmatpush1.bf16.msra.mxu1 %v1230_v25 }
  0xdc   : > { %682 = vmatprep.subr.bf16.mxu1 %v1231_v26 }
  0xdf   : > { %683 = vmatpush1.bf16.msra.mxu1 %v1233_v27 }
  0xe0   : > { %684 = vmatprep.subr.bf16.mxu1 %v1234_v28 }
  0xe3   : > { %685 = vmatpush1.bf16.msra.mxu1 %v1236_v29 }
  0xe4   : > { %686 = vmatprep.subr.bf16.mxu1 %v1237_v30 }
  0xe7   : > { %687 = vmatpush1.bf16.msra.mxu1 %v1239_v31 }
  0xe8   : > { %688 = vmatprep.subr.bf16.mxu1 %v1240_v32  ;;  %v743_v32 = vld [vmem:[#allocation2] sm:$0x1] }
  0xeb   : > { %689 = vmatpush1.bf16.msra.mxu1 %v1242_v33 }
  0xec   : > { %690 = vmatprep.subr.bf16.mxu1 %v1243_v34 }
  0xef   : > { %691 = vmatpush1.bf16.msra.mxu1 %v1245_v35 }
  0xf0   : > { %692 = vmatprep.subr.bf16.mxu1 %v1246_v36 }
  0xf3   : > { %693 = vmatpush1.bf16.msra.mxu1 %v1248_v37 }
  0xf4   : > { %694 = vmatprep.subr.bf16.mxu1 %v1249_v47 }
  0xf7   : > { %695 = vmatpush1.bf16.msra.mxu1 %v1251_v48 }
  0xf8   : > { %696 = vmatprep.subr.bf16.mxu1 %v1252_v49 }
  0xfb   : > { %697 = vmatpush1.bf16.msra.mxu1 %v1254_v50 }
 0x14e   : > { %v373_v41 = vpop.xlane.xlu0 %372 }
 0x14f   : > { %v374_v42 = vpack.c.bf16 %v373_v41, %v373_v41 }
 0x151   : > { %v378_v44 = vunpack.c.l.b16 %v374_v42 }
 0x153   : > { %v384_v45 = vrot.slane %v378_v44, %v383_v43 }
 0x155   : > { %v385_v46 = vpack.c.b16 %v384_v45, %v384_v45 }
 0x157   : > { %1029 = vmatmul.mubr.msk.bf16.vlgmr.msra.gmra.mrb[0].mxu0 %vm406_vm2, %v385_v46 }
 0x158   : > { %1083 = vmatpush3.bf16.msra.mxu0 %v1256_v52 }
 0x159   : > { %1084 = vmatprep.subr.bf16.mxu0 %v1257_v53 }
 0x15c   : > { %1085 = vmatpush3.bf16.msra.mxu0 %v1258_v54 }
 0x15d   : > { %1086 = vmatprep.subr.bf16.mxu0 %v1259_v55 }
 0x160   : > { %1087 = vmatpush3.bf16.msra.mxu0 %v1260_v56 }
 0x161   : > { %1088 = vmatprep.subr.bf16.mxu0 %v1261_v57 }
 0x164   : > { %1089 = vmatpush3.bf16.msra.mxu0 %v1262_v58 }
 0x165   : > { %1090 = vmatprep.subr.bf16.mxu0 %v1263_v59 }
 0x168   : > { %1091 = vmatpush3.bf16.msra.mxu0 %v1264_v60 }
 0x169   : > { %1092 = vmatprep.subr.bf16.mxu0 %v1265_v61 }
 0x16c   : > { %1093 = vmatpush3.bf16.msra.mxu0 %v1266_v62 }
 0x16d   : > { %1094 = vmatprep.subr.bf16.mxu0 %v1267_v14 }
 0x170   : > { %1095 = vmatpush3.bf16.msra.mxu0 %v1268_v15 }
 0x171   : > { %1096 = vmatprep.subr.bf16.mxu0 %v1269_v16 }
 0x174   : > { %1097 = vmatpush3.bf16.msra.mxu0 %v1270_v17 }
 0x22a   : > { %v451_v4 = vpop.f32.mrb[0].mxu0 }
 0x22b   : > { %v452_v5 = vadd.f32 %v451_v4, %v399_v2  ;;  %v453_v6 = vpop.f32.mrb[1].mxu0 }
 0x22c   : > { %v454_v7 = vadd.f32 %v453_v6, %v403_v3  ;;  %v455_v8 = vpop.f32.mrb[2].mxu0 }
 0x22d   : > { %v458_v9 = vmax.f32 %v452_v5, 0.0  ;;  %v456_v10 = vpop.f32.mrb[3].mxu0 }
 0x22e   : > { %v459_v11 = vmax.f32 %v454_v7, 0.0 }
 0x22f   : > { %v460_v13 = vpack.c.bf16 %v458_v9, %v458_v9 }
 0x230   : > { %v461_v12 = vpack.c.bf16 %v459_v11, %v459_v11 }
 0x232   : > { %698 = vmatprep.mubr.bf16.mxu1 %v461_v12 }
 0x233   : > { %699 = vmatmul.mubr.bf16.vlgmr.msra.gmra.mrb[0].mxu1 %v460_v13 }
 0x306   : > { %v700_v21 = vpop.f32.mrb[0].mxu1 }
 0x307   : > { %v701_v22 = vadd.f32 %v700_v21, %v659_v19  ;;  %v702_v23 = vpop.f32.mrb[1].mxu1 }
 0x308   : > { %v703_v24 = vadd.f32 %v702_v23, %v663_v20  ;;  %v704_v25 = vpop.f32.mrb[2].mxu1 }
 0x309   : > { %v707_v26 = vmax.f32 %v701_v22, 0.0  ;;  %v705_v27 = vpop.f32.mrb[3].mxu1 }
 0x30a   : > { %v708_v28 = vmax.f32 %v703_v24, 0.0 }
 0x30b   : > { %v709_v30 = vpack.c.bf16 %v707_v26, %v707_v26 }
 0x30c   : > { %v710_v29 = vpack.c.bf16 %v708_v28, %v708_v28 }
 0x30e   : > { %872 = vmatprep.mubr.bf16.mxu0 %v710_v29 }
 0x30f   : > { %873 = vmatmul.mubr.bf16.vlgmr.msra.gmra.mrb[4].mxu0 %v709_v30 }
 0x3e2   : > { %v1098_v31 = vpop.f32.mrb[4].mxu0 }
 0x3e3   : > { %v1099_v33 = vpop.f32.mrb[5].mxu0 }
 0x3e4   : > { %v1100_v34 = vadd.f32 %v1099_v33, %v1098_v31  ;;  %v1101_v35 = vpop.f32.mrb[6].mxu0 }
 0x3e5   : > { %v1102_v36 = vpop.f32.mrb[7].mxu0 }
 0x3e6   : > { %v875_v37 = vadd.f32 %v1100_v34, %v743_v32 }
 0x3e8   : > { %881 = vst.msk [vmem:[%s362_s12] sm:$0x1] %vm880_vm3, %v875_v37 }
 0x3e9   : > { %1454 = shalt.err (!%p1451_p9)
}
 0x3ea   : > { %s1455_s16 = scalar_lea.hbm %s1827_s13, 16  ;;  %s1459_s21 = scalar_lea.hbm %s1878_s7, 32 }
 0x3eb   : > { %p1456_p6 = scmp.ne.s32.totalorder %s1827_s13, %s1455_s16  ;;  %p1460_p8 = scmp.lt.u32.totalorder %s1827_s13, %s1878_s7 }
 0x3ec   : > { %p1461_p10 = scmp.lt.u32.totalorder %s1459_s21, %s1455_s16  ;;  %p1463_p11 = scmp.lt.u32.totalorder %s1455_s16, %s1827_s13 }
 0x3ed   : > { %p1457_p0 = pnand %p1456_p6, %p1897_p13 }
 0x3ee   : > { %p1462_p12 = por %p1461_p10, %p1460_p8 }
 0x3ef   : > { %p1458_p2 = pneg %p1457_p0 }
 0x3f0   : > { %p1464_p5 = por %p1463_p11, %p1462_p12 }
 0x3f2   : > { %p1465_p7 = pnand %p1464_p5, %p1458_p2 }
 0x3f4   : > { %1468 = shalt.err (!%p1465_p7)
}
 0x3f5   : > { %1126 = dma.vmem_to_hbm [thread:$0]  (%p1897_p13), %s1829_s6, 16, %s1827_s13, %s883_s24  }
 0x3f6 PF: > { %s907_s12 = sand.u32 1, %s1507_s26   ;;  %p1898_p4 = scmp.ne.s32.totalorder %s1888_s30, 0 }
 0x3f7   : > { %p1899_p1 = scmp.ge.s32.totalorder %s1519_s29, 2  ;;  %s908_s20 = scalar_lea.sflag [#allocation5], %s907_s12 }
 0x3f9   : > { %p1149_p3 = pnand %p1899_p1, %p1898_p4 }
 0x3fb   : > { %1502 = dma.done.wait (!%p1149_p3), %s908_s20, 16  }
 0x3fc   : > { %1504 = vsyncadd (!%p1149_p3), %s908_s20, 4294967280  ;;  %p25_p9 = scmp.ge.s32.totalorder %s1727_s14, 4   ;;  %s1900_s26 = smov %s1511_s27 }
 0x3fd   : > { %s1901_s27 = smov %s1515_s28  ;;  %s1902_s28 = smov %s1739_s17 }
 0x3fe   : > { %s1903_s29 = smov %s1727_s14  ;;  %27 = sbr.rel (!%p25_p9) target bundleno = 11 (0xb), region = 113 }
 0x405   :  { %912 = vsyncpa [#allocation4], 1 }
 0x406   :  { %914 = vsyncpa [#allocation4 + $0x1], 1 }
 0x407   :  { %915 = vsyncpa [#allocation7], 1 }
 0x408   :  { %916 = vsyncpa [#allocation10], 1 }
 0x409   :  { %917 = vsyncpa [#allocation13], 1 }
 0x40a   :  { %918 = vsyncpa [#allocation5], 1 }
 0x40b   :  { %920 = vsyncpa [#allocation5 + $0x1], 1 }

</bundles_post_ra>
